<compile_context>
chip_gen: v7x
topology: tpu7x:2x2x1
jax: 0.10.0
libtpu: 0.0.40
codegen_flags: <defaults>
</compile_context>

<pallas_src>
import functools

import jax
import jax.numpy as jnp
from jax import lax
from jax.experimental import pallas as pl
from jax.experimental.pallas import tpu as pltpu

LANE = 128
TM_MAX = 4096          # rows per tile -> 2 MiB f32 / 1 MiB bf16 per input tile
EPS = 1e-6


def _round_up(v, m):
    return ((v + m - 1) // m) * m


def _num_tensorcores():
    """Number of TensorCores one Pallas grid spans on this device."""
    try:
        kind = jax.devices()[0].device_kind.lower()
    except Exception:
        return 1
    # Chips where one JAX device == one TensorCore.
    for single in ("lite", "v5e", "v6e", "v2", "v3"):
        if single in kind:
            return 1
    return 2   # v4 / v5p megacore, v7x: 2 TensorCores per device


def _partial_sums_kernel(x_ref, t_ref, out_ref, acc_p, acc_s, *,
                         tm, nblk, rows, masked):
    """Accumulate P = sum(x*t) and S = sum(x+t) into vreg-sized partials.

    Grid = (ncores, nblk); axis 0 is 'parallel' (one iteration per TensorCore),
    axis 1 walks this core's row-blocks.  acc_p / acc_s are (8, LANE) f32 VMEM
    scratch; each (tm, LANE) tile is folded to (8, LANE) with pure VPU adds and
    the single cross-sublane reduction happens in the jnp epilogue outside.
    """
    c = pl.program_id(0)
    s = pl.program_id(1)

    @pl.when(s == 0)
    def _init():
        acc_p[...] = jnp.zeros_like(acc_p)
        acc_s[...] = jnp.zeros_like(acc_s)

    x = x_ref[...].astype(jnp.float32)     # (tm, LANE), cast in-kernel (bf16 stays 2B in HBM)
    t = t_ref[...].astype(jnp.float32)

    def fold(v):                           # (tm, LANE) -> (8, LANE): sublane-group add tree
        return v.reshape(tm // 8, 8, LANE).sum(axis=0)

    def accumulate(xv, tv):
        acc_p[...] += fold(xv * tv)
        acc_s[...] += fold(xv + tv)

    if masked:
        # Only blocks that overhang the row extent pay for iota/compare/select.
        b = c * nblk + s                   # logical (unclamped) row-block index
        overhangs = (b + 1) * tm > rows

        @pl.when(jnp.logical_not(overhangs))
        def _fast():
            accumulate(x, t)

        @pl.when(overhangs)
        def _edge():
            row = lax.broadcasted_iota(jnp.int32, (tm, LANE), 0) + b * tm
            valid = row < rows
            accumulate(jnp.where(valid, x, 0.0), jnp.where(valid, t, 0.0))
    else:
        accumulate(x, t)

    @pl.when(s == nblk - 1)
    def _finalize():
        out_ref[0, 0:8, :] = acc_p[...]
        out_ref[0, 8:16, :] = acc_s[...]


@jax.jit
def symmetric_dice_loss(inputs, targets):
    """Symmetric(soft-Dice)(inputs, targets) -> scalar f32."""
    assert inputs.shape == targets.shape
    n = inputs.size
    n_f = jnp.float32(n)

    x = inputs.reshape(-1)
    t = targets.reshape(-1)

    rows = n // LANE
    aligned = rows * LANE
    tail = n - aligned

    # <128-element tail handled with plain jnp (avoids padded full-array copies
    # for lane-unaligned sizes; padded zeros would be wasted HBM traffic).
    if tail:
        xt = x[aligned:].astype(jnp.float32)
        tt = t[aligned:].astype(jnp.float32)
        p_tail = jnp.sum(xt * tt)
        s_tail = jnp.sum(xt + tt)
    else:
        p_tail = jnp.float32(0.0)
        s_tail = jnp.float32(0.0)

    if rows == 0:
        P, S = p_tail, s_tail
    else:
        x2 = (x[:aligned] if tail else x).reshape(rows, LANE)
        t2 = (t[:aligned] if tail else t).reshape(rows, LANE)

        ncores = _num_tensorcores()
        itemsize = jnp.dtype(inputs.dtype).itemsize
        sub_mult = max(8, 32 // max(itemsize, 1))      # 8 f32, 16 bf16, 32 int8/fp8
        rows_pc = pl.cdiv(rows, ncores)
        tm = min(TM_MAX, _round_up(rows_pc, sub_mult))

        total_blocks = pl.cdiv(rows, tm)
        nblk = pl.cdiv(total_blocks, ncores)
        masked = (ncores * nblk * tm) != rows          # static: any overhang possible?

        if ncores * nblk > total_blocks:
            # Some logical blocks fall entirely past the array: clamp the DMA
            # source (their contribution is zeroed by the in-kernel mask).
            in_idx = lambda c, s: (jnp.minimum(c * nblk + s, total_blocks - 1), 0)
        else:
            in_idx = lambda c, s: (c * nblk + s, 0)

        in_spec = pl.BlockSpec((tm, LANE), in_idx)
        out_spec = pl.BlockSpec((1, 16, LANE), lambda c, s: (c, 0, 0))

        kernel = functools.partial(_partial_sums_kernel, tm=tm, nblk=nblk,
                                   rows=rows, masked=masked)

        parts = pl.pallas_call(
            kernel,
            out_shape=jax.ShapeDtypeStruct((ncores, 16, LANE), jnp.float32),
            grid_spec=pltpu.PrefetchScalarGridSpec(
                num_scalar_prefetch=0,
                grid=(ncores, nblk),
                in_specs=[in_spec, in_spec],
                out_specs=out_spec,
                scratch_shapes=[pltpu.VMEM((8, LANE), jnp.float32),
                                pltpu.VMEM((8, LANE), jnp.float32)],
            ),
            compiler_params=pltpu.CompilerParams(
                dimension_semantics=("parallel", "arbitrary")),
        )(x2, t2)

        P = jnp.sum(parts[:, 0:8, :]) + p_tail         # sum(x * t)
        S = jnp.sum(parts[:, 8:16, :]) + s_tail        # sum(x) + sum(t)

    # Symmetric soft-Dice: background-pass terms derived algebraically from N.
    dice_fg = 1.0 - (2.0 * P + EPS) / (S + EPS)
    dice_bg = 1.0 - (2.0 * (n_f - S + P) + EPS) / (2.0 * n_f - S + EPS)
    return 0.5 * (dice_fg + dice_bg)


# ---------------------------------------------------------------------------
# pure-JAX reference (mirrors the PyTorch module semantics exactly)
# ---------------------------------------------------------------------------
def _dice_ref(p, t):
    p = p.astype(jnp.float32)
    t = t.astype(jnp.float32)
    inter = jnp.sum(p * t)
    return 1.0 - (2.0 * inter + EPS) / (jnp.sum(p) + jnp.sum(t) + EPS)


def _symmetric_ref(inputs, targets):
    return 0.5 * (_dice_ref(1.0 - inputs, 1.0 - targets) + _dice_ref(inputs, targets))


if __name__ == "__main__":
    key = jax.random.PRNGKey(0)
    k1, k2, k3, k4 = jax.random.split(key, 4)

    # NCHW, matching the PyTorch convention of the wrapped Dice loss.
    B, C, H, W = 2, 4, 16, 16
    inputs = jax.nn.sigmoid(jax.random.normal(k1, (B, C, H, W), jnp.float32))
    targets = (jax.random.uniform(k2, (B, C, H, W)) > 0.5).astype(jnp.float32)

    loss = jax.block_until_ready(symmetric_dice_loss(inputs, targets))
    ref = jax.block_until_ready(_symmetric_ref(inputs, targets))
    assert jnp.allclose(loss, ref, atol=1e-5, rtol=1e-5), (loss, ref)

    # Lane-unaligned shape: exercises the jnp tail path and (on multi-core
    # devices) the masked edge-block path.
    shp = (3, 5, 7, 11)
    inputs2 = jax.nn.sigmoid(jax.random.normal(k3, shp, jnp.float32))
    targets2 = (jax.random.uniform(k4, shp) > 0.5).astype(jnp.float32)
    loss2 = jax.block_until_ready(symmetric_dice_loss(inputs2, targets2))
    ref2 = jax.block_until_ready(_symmetric_ref(inputs2, targets2))
    assert jnp.allclose(loss2, ref2, atol=1e-5, rtol=1e-5), (loss2, ref2)

    print("KERNEL_OK")
</pallas_src>

<mosaic_0001>
module attributes {stable_mosaic.version = 11 : i64} {
  func.func @_partial_sums_kernel(%arg0: i32, %arg1: i32, %arg2: memref<8x128xf32, #tpu.memory_space<vmem>>, %arg3: memref<8x128xf32, #tpu.memory_space<vmem>>, %arg4: memref<1x16x128xf32, #tpu.memory_space<vmem>>, %arg5: memref<8x128xf32, #tpu.memory_space<vmem>>, %arg6: memref<8x128xf32, #tpu.memory_space<vmem>>) attributes {dimension_semantics = [#tpu.dimension_semantics<parallel>, #tpu.dimension_semantics<arbitrary>], iteration_bounds = array<i64: 2, 1>, scalar_prefetch = 0 : i64, scratch_operands = 2 : i64, tpu.core_type = #tpu.core_type<tc>, window_params = [{transform_indices = @transform_0, window_bounds = array<i64: 8, 128>}, {transform_indices = @transform_1, window_bounds = array<i64: 8, 128>}, {transform_indices = @transform_2, window_bounds = array<i64: 1, 16, 128>}]} {
    %c0_i32 = arith.constant 0 : i32
    %0 = arith.cmpi eq, %arg1, %c0_i32 : i32
    %1 = arith.extui %0 : i1 to i32
    %c0_i32_0 = arith.constant 0 : i32
    %2 = arith.cmpi ne, %1, %c0_i32_0 : i32
    scf.if %2 {
      %cst_15 = arith.constant 0.000000e+00 : f32
      %20 = vector.broadcast %cst_15 : f32 to vector<8x128xf32>
      %c0_16 = arith.constant 0 : index
      %c0_17 = arith.constant 0 : index
      %21 = vector.load %arg5[%c0_16, %c0_17] : memref<8x128xf32, #tpu.memory_space<vmem>>, vector<8x128xf32>
      tpu.vector_store %arg5[%c0_16, %c0_17], %20 {strides = array<i32>} : memref<8x128xf32, #tpu.memory_space<vmem>>, vector<8x128xf32>,
      %cst_18 = arith.constant 0.000000e+00 : f32
      %22 = vector.broadcast %cst_18 : f32 to vector<8x128xf32>
      %c0_19 = arith.constant 0 : index
      %c0_20 = arith.constant 0 : index
      %23 = vector.load %arg6[%c0_19, %c0_20] : memref<8x128xf32, #tpu.memory_space<vmem>>, vector<8x128xf32>
      tpu.vector_store %arg6[%c0_19, %c0_20], %22 {strides = array<i32>} : memref<8x128xf32, #tpu.memory_space<vmem>>, vector<8x128xf32>,
    } else {
    }
    %c0 = arith.constant 0 : index
    %c0_1 = arith.constant 0 : index
    %3 = vector.load %arg2[%c0, %c0_1] : memref<8x128xf32, #tpu.memory_space<vmem>>, vector<8x128xf32>
    %c0_2 = arith.constant 0 : index
    %c0_3 = arith.constant 0 : index
    %4 = vector.load %arg3[%c0_2, %c0_3] : memref<8x128xf32, #tpu.memory_space<vmem>>, vector<8x128xf32>
    %c0_4 = arith.constant 0 : index
    %c0_5 = arith.constant 0 : index
    %5 = vector.load %arg5[%c0_4, %c0_5] : memref<8x128xf32, #tpu.memory_space<vmem>>, vector<8x128xf32>
    %6 = arith.mulf %3, %4 : vector<8x128xf32>
    %7 = vector.shape_cast %6 : vector<8x128xf32> to vector<1x8x128xf32>
    %cst = arith.constant dense<0.000000e+00> : vector<8x128xf32>
    %8 = vector.multi_reduction <add>, %7, %cst [0] : vector<1x8x128xf32> to vector<8x128xf32>
    %9 = arith.addf %5, %8 : vector<8x128xf32>
    %c0_6 = arith.constant 0 : index
    %c0_7 = arith.constant 0 : index
    %10 = vector.load %arg5[%c0_6, %c0_7] : memref<8x128xf32, #tpu.memory_space<vmem>>, vector<8x128xf32>
    tpu.vector_store %arg5[%c0_6, %c0_7], %9 {strides = array<i32>} : memref<8x128xf32, #tpu.memory_space<vmem>>, vector<8x128xf32>,
    %c0_8 = arith.constant 0 : index
    %c0_9 = arith.constant 0 : index
    %11 = vector.load %arg6[%c0_8, %c0_9] : memref<8x128xf32, #tpu.memory_space<vmem>>, vector<8x128xf32>
    %12 = arith.addf %3, %4 : vector<8x128xf32>
    %13 = vector.shape_cast %12 : vector<8x128xf32> to vector<1x8x128xf32>
    %cst_10 = arith.constant dense<0.000000e+00> : vector<8x128xf32>
    %14 = vector.multi_reduction <add>, %13, %cst_10 [0] : vector<1x8x128xf32> to vector<8x128xf32>
    %15 = arith.addf %11, %14 : vector<8x128xf32>
    %c0_11 = arith.constant 0 : index
    %c0_12 = arith.constant 0 : index
    %16 = vector.load %arg6[%c0_11, %c0_12] : memref<8x128xf32, #tpu.memory_space<vmem>>, vector<8x128xf32>
    tpu.vector_store %arg6[%c0_11, %c0_12], %15 {strides = array<i32>} : memref<8x128xf32, #tpu.memory_space<vmem>>, vector<8x128xf32>,
    %c0_i32_13 = arith.constant 0 : i32
    %17 = arith.cmpi eq, %arg1, %c0_i32_13 : i32
    %18 = arith.extui %17 : i1 to i32
    %c0_i32_14 = arith.constant 0 : i32
    %19 = arith.cmpi ne, %18, %c0_i32_14 : i32
    scf.if %19 {
      %c0_15 = arith.constant 0 : index
      %c0_16 = arith.constant 0 : index
      %20 = vector.load %arg5[%c0_15, %c0_16] : memref<8x128xf32, #tpu.memory_space<vmem>>, vector<8x128xf32>
      %c0_17 = arith.constant 0 : index
      %c0_18 = arith.constant 0 : index
      %c0_19 = arith.constant 0 : index
      %21 = vector.load %arg4[%c0_17, %c0_18, %c0_19] : memref<1x16x128xf32, #tpu.memory_space<vmem>>, vector<1x8x128xf32>
      %22 = vector.shape_cast %21 : vector<1x8x128xf32> to vector<8x128xf32>
      %23 = vector.shape_cast %20 : vector<8x128xf32> to vector<1x8x128xf32>
      tpu.vector_store %arg4[%c0_17, %c0_18, %c0_19], %23 {strides = array<i32>} : memref<1x16x128xf32, #tpu.memory_space<vmem>>, vector<1x8x128xf32>,
      %c0_20 = arith.constant 0 : index
      %c0_21 = arith.constant 0 : index
      %24 = vector.load %arg6[%c0_20, %c0_21] : memref<8x128xf32, #tpu.memory_space<vmem>>, vector<8x128xf32>
      %c0_22 = arith.constant 0 : index
      %c8 = arith.constant 8 : index
      %c0_23 = arith.constant 0 : index
      %25 = vector.load %arg4[%c0_22, %c8, %c0_23] : memref<1x16x128xf32, #tpu.memory_space<vmem>>, vector<1x8x128xf32>
      %26 = vector.shape_cast %25 : vector<1x8x128xf32> to vector<8x128xf32>
      %27 = vector.shape_cast %24 : vector<8x128xf32> to vector<1x8x128xf32>
      tpu.vector_store %arg4[%c0_22, %c8, %c0_23], %27 {strides = array<i32>} : memref<1x16x128xf32, #tpu.memory_space<vmem>>, vector<1x8x128xf32>,
    } else {
    }
    return
  }
  func.func @transform_0(%arg0: i32, %arg1: i32) -> (i32, i32) {
    %c1_i32 = arith.constant 1 : i32
    %0 = arith.muli %arg0, %c1_i32 : i32
    %1 = arith.addi %0, %arg1 : i32
    %c0_i32 = arith.constant 0 : i32
    %c0_i32_0 = arith.constant 0 : i32
    return %1, %c0_i32 : i32, i32
  }
  func.func @transform_1(%arg0: i32, %arg1: i32) -> (i32, i32) {
    %c1_i32 = arith.constant 1 : i32
    %0 = arith.muli %arg0, %c1_i32 : i32
    %1 = arith.addi %0, %arg1 : i32
    %c0_i32 = arith.constant 0 : i32
    %c0_i32_0 = arith.constant 0 : i32
    return %1, %c0_i32 : i32, i32
  }
  func.func @transform_2(%arg0: i32, %arg1: i32) -> (i32, i32, i32) {
    %c0_i32 = arith.constant 0 : i32
    %c0_i32_0 = arith.constant 0 : i32
    %c0_i32_1 = arith.constant 0 : i32
    return %arg0, %c0_i32, %c0_i32_0 : i32, i32, i32
  }
}

</mosaic_0001>

<bundles_post_ra>
// kernel: symmetric_dice_loss.1
= control target key start
LH: loop header
LB: loop body
LE: loop exit
PB: predicated region body
PF: predicated region fallthrough
CT: control target
= control target key end

     0   :  { %s359_s9 = smov 0   ;;  %s361_s10 = smov 0   ;;  %s383_s0 = inlined_call_operand.vmem [shape: f32[16,128], index: 0, kind: input, shape index: {}]   ;;  %s384_s1 = inlined_call_operand.vmem [shape: f32[16,128], index: 1, kind: input, shape index: {}]   ;;  %s385_s2 = inlined_call_operand.vmem [shape: f32[2,16,128], index: 2, kind: output, shape index: {}]  }
   0x1   :  { %s363_s11 = smov 0  }
   0x2 LB: > { %s24_s12 = sadd.s32 1, %s338_s10  ;;  %p288_p0 = scmp.ge.s32.totalorder %s342_s11, 1  ;;  %s342_s11 = sphi %s363_s11, %s12_s11   ;;  %s338_s10 = sphi %s361_s10, %s387_s10   ;;  %s334_s9 = sphi %s359_s9, %s386_s9  }
   0x3   : > { %p26_p1 = scmp.ge.s32.totalorder %s24_s12, 2  ;;  %p140_p2 = scmp.lt.s32.totalorder %s342_s11, 3 }
   0x5   : > { %s389_s12 = smov (%p26_p1, %s24_s12), 0  ;;  %p141_p3 = pnand %p288_p0, %p140_p2 }
   0x6   : > { %p168_p4 = scmp.lt.s32.totalorder (!%p141_p3), %s334_s9, 1 }
   0x7   : > { %144 = sbr.rel (%p141_p3) target bundleno = 22 (0x16), region = 28 }
   0xe   : > { %s391_s9 = smov (!%p168_p4, %s334_s9), 1 }
   0xf   : > { %s289_s13 = sshll.u32 %s391_s9, 3  ;;  %s295_s14 = sshll.u32 %s391_s9, 4 }
  0x10   : > { %s171_s17 = scalar_lea.vmem %s383_s0, %s289_s13  ;;  %s177_s20 = scalar_lea.vmem %s384_s1, %s289_s13 }
  0x11   : > { %s183_s23 = scalar_lea.vmem %s385_s2, %s295_s14  ;;  %v190_v0 = vld [vmem:[%s171_s17] sm:$0xff] }
  0x12   : > { %v191_v1 = vld [vmem:[%s177_s20] sm:$0xff] }
  0x13   : > { %v193_v2 = vmul.f32 %v191_v1, %v190_v0  ;;  %v198_v3 = vadd.f32 %v191_v1, %v190_v0 }
  0x15   : > { %206 = vst [vmem:[%s183_s23] sm:$0xff] %v193_v2  ;;  %208 = vst [vmem:[%s183_s23 + $0x8] sm:$0xff] %v198_v3 }
  0x16 PF: > { %s12_s11 = sadd.s32 1, %s342_s11   ;;  %s386_s9 = smov %s338_s10 }
  0x17   : > { %p9_p5 = scmp.ge.s32.totalorder %s12_s11, 4   ;;  %s387_s10 = smov %s389_s12 }
  0x19   :  { %11 = sbr.rel (!%p9_p5) target bundleno = 2 (0x2), region = 69 }

</bundles_post_ra>
